<compile_context>
chip_gen: v7x
topology: tpu7x:2x2x1
jax: 0.10.0
libtpu: 0.0.40
codegen_flags: <defaults>
</compile_context>

<pallas_src>
import functools

import jax
import jax.numpy as jnp
from jax.experimental import pallas as pl
from jax.experimental.pallas import tpu as pltpu

# HWGQ step sizes keyed by bit-width (from the reference implementation).
HWGQ_STEPS = {1: 0.799, 2: 0.538, 3: 0.3217, 4: 0.185, 5: 0.102, 32: 0.0}

LANES = 512                       # lane-dense last dim (multiple of 128)
SUBLANES = 8
GRANULE_1D = SUBLANES * 128       # 1024-element granule for 1D blocks


def _detect_tpu():
    """Best-effort generation query; conservative fallbacks on any failure."""
    vmem_cap = 128 << 20          # v5e/v6e VMEM per TensorCore
    num_cores = 1                 # v5e/v6e: 1 TensorCore per chip
    try:
        info = pltpu.get_tpu_info()
        vmem_cap = int(getattr(info, "vmem_capacity_bytes", vmem_cap))
        cores = None
        for name in ("num_cores", "core_count", "num_tensorcores",
                     "tensorcores_per_chip"):
            v = getattr(info, name, None)
            if isinstance(v, int) and v > 0:
                cores = v
                break
        if cores is None:
            # v7x-class: 64 MiB VMEM per TC, 2 TCs per chip.
            cores = 2 if vmem_cap <= (64 << 20) else 1
        num_cores = cores
    except Exception:
        pass
    return vmem_cap, num_cores


_VMEM_CAP, _NUM_CORES = _detect_tpu()
_IS_V7X_CLASS = _VMEM_CAP <= (64 << 20)

# 8 MiB blocks on v7x-class chips, 4 MiB on v5e/v6e.  in+out double-buffered
# working set = 4x block bytes (16 / 32 MiB) -> fits the 48 MiB scoped limit
# below, and well under physical VMEM everywhere.
TARGET_BLOCK_BYTES = (8 << 20) if _IS_V7X_CLASS else (4 << 20)
TARGET_BLOCK_ROWS = TARGET_BLOCK_BYTES // (LANES * 4)
TARGET_BLOCK_ELEMS = TARGET_BLOCK_BYTES // 4
VMEM_LIMIT_BYTES = 48 << 20
MIN_GRID_STEPS = 2 * max(_NUM_CORES, 1)   # >=2 steps per core for DMA overlap


def _make_qrelu_kernel(inv_steps, clips):
    """inv_steps / clips are Python-float tuples baked in as compile-time consts.

    The per-branch clamp(min=0) of the reference subsumes the act_func ReLU,
    so one shared max(x, 0) is computed once for all branches.
    """

    def kernel(w_ref, x_ref, o_ref):
        x0 = jnp.maximum(x_ref[...], 0.0)          # shared lower clamp / ReLU
        # Initialize the accumulator with branch 0: saves a zero splat + vadd
        # per vreg relative to zeros_like + add (VALU matters on v7x).
        acc = jnp.round(jnp.minimum(x0, clips[0]) * inv_steps[0]) * w_ref[0]
        for i in range(1, len(inv_steps)):
            y = jnp.minimum(x0, clips[i])          # clamp(min=0, max=clip_thr[i])
            # round(y / step) * step * softmask == round(y * inv_step) * w
            # with w = step * softmask folded in the wrapper (SMEM scalar).
            acc = acc + jnp.round(y * inv_steps[i]) * w_ref[i]
        o_ref[...] = acc

    return kernel


def _gumbel_softmax(logits, key, tau=1.0):
    # F.gumbel_softmax(theta, tau=1, hard=False, dim=0)
    u = jax.random.uniform(key, logits.shape, dtype=logits.dtype,
                           minval=1e-20, maxval=1.0)
    gumbels = -jnp.log(-jnp.log(u))
    return jax.nn.softmax((logits + gumbels) / tau, axis=0)


def _block_rows_for(rows):
    if rows <= SUBLANES:
        return rows                                 # single (full-dim) block
    # Keep >= MIN_GRID_STEPS grid steps so every TensorCore double-buffers,
    # otherwise use big blocks to sit on the HBM roofline.
    cap = max(SUBLANES, (rows // MIN_GRID_STEPS) // SUBLANES * SUBLANES)
    return min(TARGET_BLOCK_ROWS, cap)


def _block_elems_for(n):
    if n <= GRANULE_1D:
        return n                                    # single (full-dim) block
    cap = max(GRANULE_1D, (n // MIN_GRID_STEPS) // GRANULE_1D * GRANULE_1D)
    return min(TARGET_BLOCK_ELEMS, cap)


@functools.partial(jax.jit, static_argnames=("bits", "act_func"))
def q_relu_forward(x, theta, key, *, bits, act_func=True):
    """Forward pass of Q_ReLU (initialized with `bits`).

    x:     NCHW float32 tensor
    theta: float32 vector of shape (len(bits),)
    bits:  tuple of ints (e.g. (2, 4)); if bits == (32,), returns (relu(x), 32).
    Returns (x_bar, act_size), matching the PyTorch module.
    """
    bits = tuple(int(b) for b in bits)

    if len(bits) == 1 and bits[0] == 32:
        # Non-quantized path of the module (default __init__ state).
        return (jnp.maximum(x, 0.0) if act_func else x), jnp.float32(32)

    if 32 in bits:
        # HWGQ step for 32 bits is 0 -> 1/step is inf; PyTorch reference would
        # also break.  Refuse instead of silently producing inf/NaN.
        raise ValueError("bits mixing 32 with quantized widths is unsupported")

    # Per-bit constants (Python floats, baked into the kernel).
    steps = tuple(float(HWGQ_STEPS[b]) for b in bits)
    clips = tuple(s * float(2 ** b - 1) for s, b in zip(steps, bits))
    inv_steps = tuple(1.0 / s for s in steps)

    # Gumbel-softmax over theta (tiny vector op, plain JAX glue).
    softmask = _gumbel_softmax(theta.astype(jnp.float32), key, tau=1.0)
    act_size = jnp.sum(softmask * jnp.asarray(bits, dtype=jnp.float32))
    # Fold step[i] into the mask -> one fewer vmul per branch in the kernel.
    weights = softmask * jnp.asarray(steps, dtype=jnp.float32)

    orig_shape = x.shape
    flat = x.reshape(-1)                 # contiguous view: free bitcast
    n = flat.shape[0]

    kernel = _make_qrelu_kernel(inv_steps, clips)
    compiler_params = pltpu.CompilerParams(
        dimension_semantics=("parallel",),
        vmem_limit_bytes=VMEM_LIMIT_BYTES)
    cost = pl.CostEstimate(flops=(1 + 5 * len(bits)) * n,
                           transcendentals=0,
                           bytes_accessed=2 * 4 * n)

    if n % LANES == 0:
        # Lane-dense 2D slab; no padding needed.  A ragged last row-block is
        # handled by Pallas partial-block DMAs (stores of stale rows masked).
        x2d = flat.reshape(-1, LANES)
        rows = x2d.shape[0]
        block_rows = _block_rows_for(rows)
        grid = (pl.cdiv(rows, block_rows),)
        out = pl.pallas_call(
            kernel,
            out_shape=jax.ShapeDtypeStruct(x2d.shape, x2d.dtype),
            grid=grid,
            in_specs=[
                pl.BlockSpec(memory_space=pltpu.MemorySpace.SMEM),    # weights
                pl.BlockSpec((block_rows, LANES), lambda i: (i, 0)),  # x tile
            ],
            out_specs=pl.BlockSpec((block_rows, LANES), lambda i: (i, 0)),
            compiler_params=compiler_params,
            cost_estimate=cost,
        )(weights, x2d)
    else:
        # Unaligned flat size: run directly on the 1D flat view.  No pad /
        # unpad full-tensor HBM passes; the ragged last block is a partial DMA.
        block_elems = _block_elems_for(n)
        grid = (pl.cdiv(n, block_elems),)
        out = pl.pallas_call(
            kernel,
            out_shape=jax.ShapeDtypeStruct(flat.shape, flat.dtype),
            grid=grid,
            in_specs=[
                pl.BlockSpec(memory_space=pltpu.MemorySpace.SMEM),    # weights
                pl.BlockSpec((block_elems,), lambda i: (i,)),         # x chunk
            ],
            out_specs=pl.BlockSpec((block_elems,), lambda i: (i,)),
            compiler_params=compiler_params,
            cost_estimate=cost,
        )(weights, flat)

    x_bar = out.reshape(orig_shape)
    return x_bar, act_size


def _reference_forward(x, theta, key, bits, act_func=True):
    """Pure-JAX reference mirroring the PyTorch forward (same gumbel draw)."""
    if act_func:
        x = jnp.maximum(x, 0.0)
    if len(bits) == 1 and bits[0] == 32:
        return x, jnp.float32(32)
    steps = [float(HWGQ_STEPS[b]) for b in bits]
    clips = [s * (2 ** b - 1) for s, b in zip(steps, bits)]
    softmask = _gumbel_softmax(theta.astype(jnp.float32), key, tau=1.0)
    x_bar = jnp.zeros_like(x)
    for i in range(len(bits)):
        y = jnp.clip(x, 0.0, clips[i])
        x_bar = x_bar + jnp.round(y / steps[i]) * steps[i] * softmask[i]
    act_size = jnp.sum(softmask * jnp.asarray(bits, dtype=jnp.float32))
    return x_bar, act_size


if __name__ == "__main__":
    key = jax.random.PRNGKey(0)
    k_x, k_gumbel, k_x2, k_x3, k_x4 = jax.random.split(key, 5)

    # Module initialized with bits=[2, 4]: theta = ones(len(bits)) / len(bits)
    bits = (2, 4)
    theta = jnp.ones((len(bits),), dtype=jnp.float32) / len(bits)

    def check(x, k):
        got_bar, got_sz = q_relu_forward(x, theta, k, bits=bits, act_func=True)
        got_bar = jax.block_until_ready(got_bar)
        got_sz = jax.block_until_ready(got_sz)
        ref_bar, ref_sz = _reference_forward(x, theta, k, bits, act_func=True)
        assert got_bar.shape == x.shape and got_bar.dtype == jnp.float32
        assert jnp.allclose(got_bar, ref_bar, atol=1e-5, rtol=1e-5)
        assert jnp.allclose(got_sz, ref_sz, atol=1e-6)

    # Test 1: small NCHW input, flat size multiple of 512 -> single 2D block.
    x1 = jax.random.normal(k_x, (2, 4, 16, 16), dtype=jnp.float32)
    check(x1, k_gumbel)

    # Test 2: aligned shape, multi-step parallel 2D grid.
    x2 = jax.random.normal(k_x2, (2, 8, 32, 32), dtype=jnp.float32)
    check(x2, k_gumbel)

    # Test 3: unaligned flat size, tiny -> 1D single full-dim block (no pad).
    x3 = jax.random.normal(k_x3, (2, 3, 5, 7), dtype=jnp.float32)
    check(x3, k_gumbel)

    # Test 4: unaligned flat size, multi-block 1D grid with ragged last block.
    x4 = jax.random.normal(k_x4, (3, 5, 37, 41), dtype=jnp.float32)
    check(x4, k_gumbel)

    # Test 5: default (uninitialized) module path: bits=[32] -> (relu(x), 32).
    theta32 = jnp.ones((1,), dtype=jnp.float32)
    y32, sz32 = q_relu_forward(x1, theta32, k_gumbel, bits=(32,), act_func=True)
    y32 = jax.block_until_ready(y32)
    assert jnp.allclose(y32, jnp.maximum(x1, 0.0))
    assert float(sz32) == 32.0

    print("KERNEL_OK")
</pallas_src>

<mosaic_0001>
module attributes {stable_mosaic.version = 11 : i64} {
  func.func @kernel(%arg0: i32, %arg1: memref<2xf32, #tpu.memory_space<smem>>, %arg2: memref<4x512xf32, #tpu.memory_space<vmem>>, %arg3: memref<4x512xf32, #tpu.memory_space<vmem>>) attributes {dimension_semantics = [#tpu.dimension_semantics<parallel>], iteration_bounds = array<i64: 1>, scalar_prefetch = 0 : i64, scratch_operands = 0 : i64, tpu.core_type = #tpu.core_type<tc>, window_params = [{transform_indices = @transform_0, window_bounds = array<i64: 2>}, {transform_indices = @transform_1, window_bounds = array<i64: 4, 512>}, {transform_indices = @transform_2, window_bounds = array<i64: 4, 512>}]} {
    %c0 = arith.constant 0 : index
    %c0_0 = arith.constant 0 : index
    %0 = vector.load %arg2[%c0, %c0_0] : memref<4x512xf32, #tpu.memory_space<vmem>>, vector<4x512xf32>
    %cst = arith.constant 0.000000e+00 : f32
    %1 = vector.broadcast %cst : f32 to vector<4x512xf32>
    %2 = arith.maximumf %0, %1 : vector<4x512xf32>
    %cst_1 = arith.constant 1.614000e+00 : f32
    %3 = vector.broadcast %cst_1 : f32 to vector<4x512xf32>
    %4 = arith.minimumf %2, %3 : vector<4x512xf32>
    %cst_2 = arith.constant 1.85873604 : f32
    %5 = vector.broadcast %cst_2 : f32 to vector<4x512xf32>
    %6 = arith.mulf %4, %5 : vector<4x512xf32>
    %7 = math.roundeven %6 : vector<4x512xf32>
    %c0_3 = arith.constant 0 : index
    %8 = memref.load %arg1[%c0_3] : memref<2xf32, #tpu.memory_space<smem>>
    %9 = vector.broadcast %8 : f32 to vector<4x512xf32>
    %10 = arith.mulf %7, %9 : vector<4x512xf32>
    %cst_4 = arith.constant 2.775000e+00 : f32
    %11 = vector.broadcast %cst_4 : f32 to vector<4x512xf32>
    %12 = arith.minimumf %2, %11 : vector<4x512xf32>
    %cst_5 = arith.constant 5.40540552 : f32
    %13 = vector.broadcast %cst_5 : f32 to vector<4x512xf32>
    %14 = arith.mulf %12, %13 : vector<4x512xf32>
    %15 = math.roundeven %14 : vector<4x512xf32>
    %c1 = arith.constant 1 : index
    %16 = memref.load %arg1[%c1] : memref<2xf32, #tpu.memory_space<smem>>
    %17 = vector.broadcast %16 : f32 to vector<4x512xf32>
    %18 = arith.mulf %15, %17 : vector<4x512xf32>
    %19 = arith.addf %10, %18 : vector<4x512xf32>
    %c0_6 = arith.constant 0 : index
    %c0_7 = arith.constant 0 : index
    %20 = vector.load %arg3[%c0_6, %c0_7] : memref<4x512xf32, #tpu.memory_space<vmem>>, vector<4x512xf32>
    tpu.vector_store %arg3[%c0_6, %c0_7], %19 {strides = array<i32>} : memref<4x512xf32, #tpu.memory_space<vmem>>, vector<4x512xf32>,
    return
  }
  func.func @transform_0(%arg0: i32) -> i32 {
    %c0_i32 = arith.constant 0 : i32
    %c0_i32_0 = arith.constant 0 : i32
    return %c0_i32 : i32
  }
  func.func @transform_1(%arg0: i32) -> (i32, i32) {
    %c0_i32 = arith.constant 0 : i32
    %c0_i32_0 = arith.constant 0 : i32
    return %arg0, %c0_i32 : i32, i32
  }
  func.func @transform_2(%arg0: i32) -> (i32, i32) {
    %c0_i32 = arith.constant 0 : i32
    %c0_i32_0 = arith.constant 0 : i32
    return %arg0, %c0_i32 : i32, i32
  }
}

</mosaic_0001>

<bundles_post_ra>
// kernel: mul.11
= control target key start
LH: loop header
LB: loop body
LE: loop exit
PB: predicated region body
PF: predicated region fallthrough
CT: control target
= control target key end

     0   :  { %s34_s0 = inlined_call_operand.vmem [shape: f32[2], index: 0, kind: input, shape index: {}]   ;;  %s35_s1 = inlined_call_operand.vmem [shape: f32[2], index: 1, kind: input, shape index: {}]   ;;  %s36_s2 = inlined_call_operand.vmem [shape: f32[2], index: 2, kind: output, shape index: {}]  }
   0x1   :  { %v3_v0 = vld [vmem:[%s34_s0] sm:$0x1] }
   0x2   :  { %v4_v1 = vld [vmem:[%s35_s1] sm:$0x1] }
   0x3   :  { %v7_v2 = vmul.f32 %v4_v1, %v3_v0 }
   0x5   :  { %9 = vst [vmem:[%s36_s2] sm:$0x1] %v7_v2 }

// kernel: q_relu_forward.1
= control target key start
LH: loop header
LB: loop body
LE: loop exit
PB: predicated region body
PF: predicated region fallthrough
CT: control target
= control target key end

     0   :  { %7 = vsyncpa [#allocation3], 0  ;;  %s108_s0 = inlined_call_operand.vmem [shape: f32[2], index: 0, kind: input, shape index: {}]   ;;  %s109_s1 = inlined_call_operand.vmem [shape: f32[4,512], index: 1, kind: input, shape index: {}]   ;;  %s110_s2 = inlined_call_operand.vmem [shape: f32[4,512], index: 2, kind: output, shape index: {}]  }
   0x1   :  { %s14_s11 = sshll.u32 %s108_s0, 4  ;;  %s15_s11 = int_to_ptr.vmem [resolvable:$true] %s14_s11 }
   0x2   :  { %s63_s12 = scalar_lea.vmem %s15_s11, 16  ;;  %p68_p1 = scmp.lt.s32.totalorder %s15_s11, %s15_s11 }
   0x3   :  { %p64_p0 = scmp.ne.s32.totalorder %s15_s11, %s63_s12  ;;  %p69_p2 = scmp.lt.s32.totalorder %s63_s12, %s63_s12 }
   0x5   :  { %p70_p3 = por %p69_p2, %p68_p1 }
   0x7   :  { %p71_p4 = pnand %p70_p3, %p64_p0 }
   0x9   :  { %74 = shalt.err (!%p71_p4)
}
   0xa   :  { %s77_s13 = smov [#allocation2]  }
   0xb   :  { %17 = dma.vmem_to_smem %s15_s11, 16, %s77_s13, [#allocation3]  }
   0xc   :  { %75 = dma.done.wait [#allocation3], 16  }
   0xd   :  { %76 = vsyncadd [#allocation3], 4294967280 }
   0xe   :  { %23 = sfence }
   0xf   :  { %v24_v0 = vld [vmem:[%s109_s1] sm:$0xff]  ;;  %s34_s16 = sld [smem:[#allocation2]]  ;;  %s57_s17 = sld [smem:[#allocation2 + $0x1]]  ;;  %v25_v1 = vld [vmem:[%s109_s1 + $0x8] sm:$0xff] }
  0x10   :  { %v26_v2 = vmax.f32 %v24_v0, 0.0  ;;  %v27_v3 = vmax.f32 %v25_v1, 0.0 }
  0x12   :  { %v28_v4 = vmin.f32 %v26_v2, 1.614  ;;  %v38_v5 = vmin.f32 %v26_v2, 2.775  ;;  %v29_v6 = vmin.f32 %v27_v3, 1.614 }
  0x13   :  { %v39_v7 = vmin.f32 %v27_v3, 2.775 }
  0x14   :  { %v30_v8 = vmul.f32 1.858736, %v28_v4  ;;  %v40_v9 = vmul.f32 5.4054055, %v38_v5  ;;  %v31_v10 = vmul.f32 1.858736, %v29_v6 }
  0x15   :  { %v35_v11 = vstv %s34_s16  ;;  %v45_v12 = vstv %s57_s17  ;;  %v41_v13 = vmul.f32 5.4054055, %v39_v7 }
  0x16   :  { %v58_v14 = vround.rtne.f32 %v30_v8  ;;  %v60_v15 = vround.rtne.f32 %v40_v9  ;;  %v59_v16 = vround.rtne.f32 %v31_v10 }
  0x17   :  { %v61_v17 = vround.rtne.f32 %v41_v13 }
  0x18   :  { %v36_v18 = vmul.f32 %v58_v14, %v35_v11  ;;  %v46_v19 = vmul.f32 %v60_v15, %v45_v12  ;;  %v37_v20 = vmul.f32 %v59_v16, %v35_v11 }
  0x19   :  { %v47_v21 = vmul.f32 %v61_v17, %v45_v12 }
  0x1a   :  { %v48_v22 = vadd.f32 %v46_v19, %v36_v18 }
  0x1b   :  { %v49_v23 = vadd.f32 %v47_v21, %v37_v20 }
  0x1c   :  { %50 = vst [vmem:[%s110_s2] sm:$0xff] %v48_v22 }
  0x1d   :  { %51 = vst [vmem:[%s110_s2 + $0x8] sm:$0xff] %v49_v23 }
  0x1e   :  { %56 = vsyncpa [#allocation3], 1 }

</bundles_post_ra>
